<compile_context>
chip_gen: v5e
topology: v5e:2x2
jax: 0.10.0
libtpu: 0.0.40
codegen_flags: <defaults>
</compile_context>

<pallas_src>
import math

import jax
import jax.numpy as jnp
from jax.experimental import pallas as pl
from jax.experimental.pallas import tpu as pltpu


_VMEM_LIMIT_BYTES = 48 * 1024 * 1024    # safe on v5e/v6e (128 MiB) and v7x (64 MiB / TC)
_BLOCK_BUDGET_BYTES = 40 * 1024 * 1024  # budget for all double-buffered pipeline blocks


def _pe_add_kernel(x_ref, pe_ref, o_ref):
    # x block: (B_blk, ts, D); pe block: (1, ts, D) -> broadcast add over the batch dim.
    o_ref[...] = (x_ref[...] + pe_ref[...]).astype(o_ref.dtype)
    # TODO(synk): fuse adjacent elementwise ops (embedding *sqrt(d_model), dropout mask) and
    # add input_output_aliases={0: 0} when x is donatable; a standalone add is already at the
    # HBM roofline, so fusion is the only remaining win.


def make_positional_encoding(d_model: int, max_len: int = 5000,
                             dtype=jnp.float32) -> jnp.ndarray:
    """Deterministic buffer construction matching the PyTorch __init__ (odd d_model safe).

    Built in f32 and cast ONCE here to the model dtype (per perf review), so the forward
    pass never pays a per-call full-buffer cast.
    """
    position = jnp.arange(max_len, dtype=jnp.float32)[:, None]             # (max_len, 1)
    div_term = jnp.exp(
        jnp.arange(0, d_model, 2, dtype=jnp.float32)
        * (-math.log(10000.0) / d_model)
    )                                                                       # (ceil(d/2),)
    angles = position * div_term                                            # (max_len, ceil(d/2))
    pe = jnp.zeros((1, max_len, d_model), dtype=jnp.float32)
    pe = pe.at[0, :, 0::2].set(jnp.sin(angles))
    pe = pe.at[0, :, 1::2].set(jnp.cos(angles[:, : d_model // 2]))          # floor(d/2) cos slots
    return pe.astype(dtype)


def positional_encoding_forward(x: jnp.ndarray, pe: jnp.ndarray,
                                block_budget_bytes: int = _BLOCK_BUDGET_BYTES) -> jnp.ndarray:
    """x: [B, S, D]; pe: [1, max_len, D]. Returns x + pe[:, :S] (in x.dtype)."""
    B, S, D = x.shape
    _, max_len, Dp = pe.shape
    assert Dp == D and S <= max_len

    itemsize = jnp.dtype(x.dtype).itemsize
    sub = max(8, 32 // itemsize)  # min sublane multiple: 8 (f32), 16 (bf16), 32 (int8)

    # Lane-dense repack for narrow feature dims: avoids masked partial stores (vst.msk).
    # PE is sliced to the S rows we use BEFORE any reshape/cast (no full-max_len relayout).
    lane_dense = (D % 128 != 0) and ((S * D) % 128 == 0)
    if lane_dense:
        S_eff, D_eff = (S * D) // 128, 128
        x_in = x.reshape(B, S_eff, D_eff)
        pe_in = pe[:, :S, :].astype(x.dtype).reshape(1, S_eff, D_eff)
        pe_rows = S_eff
        # TODO(synk): verify in xprof that these reshapes stay layout-only for D < 128.
    else:
        S_eff, D_eff = S, D
        x_in = x
        if pe.dtype != x.dtype:
            pe_in = pe[:, :S, :].astype(x.dtype)   # cast only the rows actually used
            pe_rows = S
        else:
            pe_in = pe                              # no copy; BlockSpec indexing picks rows
            pe_rows = max_len

    row_bytes = D_eff * itemsize

    # Prefer folding the batch into one block: grid=(S_tiles,), each PE tile read once and
    # B x fewer grid steps. Budget = 2*(x) + 2*(out) blocks of (B, ts, D) plus 2 PE blocks
    # of (1, ts, D), all in x.dtype.
    fold_batch = (4 * B + 2) * sub * row_bytes <= block_budget_bytes

    if S_eff < sub:
        ts = S_eff  # full-extent rows (tiny sequences)
        if pe_rows != S_eff:
            pe_in = pe_in[:, :S_eff, :]
    elif fold_batch:
        ts = block_budget_bytes // ((4 * B + 2) * row_bytes)
        ts = max(sub, (min(ts, S_eff) // sub) * sub)
    else:
        ts = block_budget_bytes // (6 * row_bytes)
        ts = max(sub, (min(ts, S_eff) // sub) * sub)

    if fold_batch:
        grid = (pl.cdiv(S_eff, ts),)
        out = pl.pallas_call(
            _pe_add_kernel,
            out_shape=jax.ShapeDtypeStruct((B, S_eff, D_eff), x.dtype),
            grid=grid,
            in_specs=[
                pl.BlockSpec((B, ts, D_eff), lambda s: (0, s, 0)),   # whole batch per tile
                pl.BlockSpec((1, ts, D_eff), lambda s: (0, s, 0)),   # PE tile, read once
            ],
            out_specs=pl.BlockSpec((B, ts, D_eff), lambda s: (0, s, 0)),
            compiler_params=pltpu.CompilerParams(
                dimension_semantics=("parallel",),
                vmem_limit_bytes=_VMEM_LIMIT_BYTES,
            ),
        )(x_in, pe_in)
    else:
        # Large-B fallback: per-batch blocks; S outer / B inner keeps the PE tile resident
        # across the batch loop.
        grid = (pl.cdiv(S_eff, ts), B)
        out = pl.pallas_call(
            _pe_add_kernel,
            out_shape=jax.ShapeDtypeStruct((B, S_eff, D_eff), x.dtype),
            grid=grid,
            in_specs=[
                pl.BlockSpec((1, ts, D_eff), lambda s, b: (b, s, 0)),
                # TODO(synk): sweep pipeline_mode=pl.Buffered(1) for this PE spec on v7x
                # (its block index only changes with the outer axis, so the 2nd buffer is
                # mostly idle VMEM).
                pl.BlockSpec((1, ts, D_eff), lambda s, b: (0, s, 0)),
            ],
            out_specs=pl.BlockSpec((1, ts, D_eff), lambda s, b: (b, s, 0)),
            compiler_params=pltpu.CompilerParams(
                dimension_semantics=("parallel", "parallel"),
                vmem_limit_bytes=_VMEM_LIMIT_BYTES,
            ),
        )(x_in, pe_in)

    if lane_dense:
        out = out.reshape(B, S, D)
    return out
    # Note: output is in x.dtype. For bf16/f16 x with an f32 PE buffer, PyTorch promotion
    # would give f32; callers wanting that should keep PE (and x) in f32.


if __name__ == "__main__":
    key = jax.random.PRNGKey(0)

    # --- Test 1: the module's natural small shape (lane-dense repack path, D=32) ---
    B, S, D = 2, 8, 32
    MAX_LEN = 64
    x = jax.random.normal(key, (B, S, D), dtype=jnp.float32)
    pe = make_positional_encoding(d_model=D, max_len=MAX_LEN)
    out = jax.block_until_ready(positional_encoding_forward(x, pe))
    ref = x + pe[:, :S, :]
    assert out.shape == (B, S, D)
    assert jnp.allclose(out, ref, atol=1e-6), "mismatch vs reference (test 1)"

    # --- Test 2: bf16 activations, f32 PE buffer (S-row slice + cast path, D=128) ---
    B2, S2, D2 = 2, 32, 128
    k2 = jax.random.PRNGKey(1)
    x2 = jax.random.normal(k2, (B2, S2, D2), dtype=jnp.bfloat16)
    pe2 = make_positional_encoding(d_model=D2, max_len=64)          # f32 buffer
    out2 = jax.block_until_ready(positional_encoding_forward(x2, pe2))
    ref2 = x2 + pe2[:, :S2, :].astype(jnp.bfloat16)
    assert out2.shape == (B2, S2, D2)
    assert jnp.allclose(out2.astype(jnp.float32), ref2.astype(jnp.float32),
                        atol=1e-6), "mismatch vs reference (test 2)"

    # --- Test 3: force the per-batch fallback path + a multi-tile grid (tiny budget) ---
    B3, S3, D3 = 2, 64, 128
    k3 = jax.random.PRNGKey(2)
    x3 = jax.random.normal(k3, (B3, S3, D3), dtype=jnp.float32)
    pe3 = make_positional_encoding(d_model=D3, max_len=128)
    out3 = jax.block_until_ready(
        positional_encoding_forward(x3, pe3, block_budget_bytes=32 * 1024))
    ref3 = x3 + pe3[:, :S3, :]
    assert out3.shape == (B3, S3, D3)
    assert jnp.allclose(out3, ref3, atol=1e-6), "mismatch vs reference (test 3)"

    print("KERNEL_OK")
</pallas_src>

<mosaic_0001>
module attributes {stable_mosaic.version = 11 : i64} {
  func.func @_pe_add_kernel(%arg0: i32, %arg1: memref<2x2x128xf32, #tpu.memory_space<vmem>>, %arg2: memref<1x2x128xf32, #tpu.memory_space<vmem>>, %arg3: memref<2x2x128xf32, #tpu.memory_space<vmem>>) attributes {dimension_semantics = [#tpu.dimension_semantics<parallel>], iteration_bounds = array<i64: 1>, scalar_prefetch = 0 : i64, scratch_operands = 0 : i64, tpu.core_type = #tpu.core_type<tc>, window_params = [{transform_indices = @transform_0, window_bounds = array<i64: 2, 2, 128>}, {transform_indices = @transform_1, window_bounds = array<i64: 1, 2, 128>}, {transform_indices = @transform_2, window_bounds = array<i64: 2, 2, 128>}]} {
    %c0 = arith.constant 0 : index
    %c0_0 = arith.constant 0 : index
    %c0_1 = arith.constant 0 : index
    %0 = vector.load %arg1[%c0, %c0_0, %c0_1] : memref<2x2x128xf32, #tpu.memory_space<vmem>>, vector<2x2x128xf32>
    %c0_2 = arith.constant 0 : index
    %c0_3 = arith.constant 0 : index
    %c0_4 = arith.constant 0 : index
    %1 = vector.load %arg2[%c0_2, %c0_3, %c0_4] : memref<1x2x128xf32, #tpu.memory_space<vmem>>, vector<1x2x128xf32>
    %2 = vector.broadcast %1 : vector<1x2x128xf32> to vector<2x2x128xf32>
    %3 = arith.addf %0, %2 : vector<2x2x128xf32>
    %c0_5 = arith.constant 0 : index
    %c0_6 = arith.constant 0 : index
    %c0_7 = arith.constant 0 : index
    %4 = vector.load %arg3[%c0_5, %c0_6, %c0_7] : memref<2x2x128xf32, #tpu.memory_space<vmem>>, vector<2x2x128xf32>
    tpu.vector_store %arg3[%c0_5, %c0_6, %c0_7], %3 {strides = array<i32>} : memref<2x2x128xf32, #tpu.memory_space<vmem>>, vector<2x2x128xf32>,
    return
  }
  func.func @transform_0(%arg0: i32) -> (i32, i32, i32) {
    %c0_i32 = arith.constant 0 : i32
    %c0_i32_0 = arith.constant 0 : i32
    %c0_i32_1 = arith.constant 0 : i32
    return %c0_i32, %arg0, %c0_i32_0 : i32, i32, i32
  }
  func.func @transform_1(%arg0: i32) -> (i32, i32, i32) {
    %c0_i32 = arith.constant 0 : i32
    %c0_i32_0 = arith.constant 0 : i32
    %c0_i32_1 = arith.constant 0 : i32
    return %c0_i32, %arg0, %c0_i32_0 : i32, i32, i32
  }
  func.func @transform_2(%arg0: i32) -> (i32, i32, i32) {
    %c0_i32 = arith.constant 0 : i32
    %c0_i32_0 = arith.constant 0 : i32
    %c0_i32_1 = arith.constant 0 : i32
    return %c0_i32, %arg0, %c0_i32_0 : i32, i32, i32
  }
}

</mosaic_0001>

<bundles_post_ra>
// kernel: tpu_custom_call.1
= control target key start
LH: loop header
LB: loop body
LE: loop exit
PB: predicated region body
PF: predicated region fallthrough
CT: control target
= control target key end

     0   :  { %7 = vsyncpa [#allocation3], 0  ;;  %s181_s0 = inlined_call_operand.hbm [shape: f32[2,2,128], index: 0, kind: input, shape index: {}]   ;;  %s182_s1 = inlined_call_operand.hbm [shape: f32[1,2,128], index: 1, kind: input, shape index: {}]   ;;  %s183_s2 = inlined_call_operand.hbm [shape: f32[2,2,128], index: 2, kind: output, shape index: {}]  }
   0x1   :  { %8 = vsyncpa [#allocation6], 0 }
   0x2   :  { %9 = vsyncpa [#allocation4], 0  ;;  %s14_s11 = sshll.u32 %s181_s0, 4  ;;  %s152_s12 = smov [#allocation2]   ;;  %s15_s11 = int_to_ptr.hbm [resolvable:$true] %s14_s11 }
   0x3   :  { %s16_s13 = sshll.u32 %s152_s12, 4  ;;  %s28_s16 = sshll.u32 %s182_s1, 4  ;;  %s17_s13 = int_to_ptr.vmem [resolvable:$true] %s16_s13  ;;  %s29_s16 = int_to_ptr.hbm [resolvable:$true] %s28_s16 }
   0x4   :  { %s153_s17 = smov 32   ;;  %s154_s18 = smov 2  }
   0x5   :  { %22 = dma.hbm_to_vmem [thread:$0]  %s15_s11, 64, %s17_s13, [#allocation3], %s153_s17, %s153_s17, %s154_s18  }
   0x6   :  { %s155_s19 = smov [#allocation5]  }
   0x7   :  { %s30_s20 = sshll.u32 %s155_s19, 4  ;;  %s31_s20 = int_to_ptr.vmem [resolvable:$true] %s30_s20 }
   0x8   :  { %33 = dma.hbm_to_vmem [thread:$0]  %s29_s16, 32, %s31_s20, [#allocation6]  }
   0x9   :  { %146 = dma.done.wait [#allocation3], 64  }
   0xa   :  { %147 = vsyncadd [#allocation3], 4294967232 }
   0xb   :  { %148 = dma.done.wait [#allocation6], 32  }
   0xc   :  { %149 = vsyncadd [#allocation6], 4294967264  ;;  %s156_s0 = smov [#allocation7]   ;;  %s55_s24 = sshll.u32 %s183_s2, 4  ;;  %v42_v0 = vld [vmem:[#allocation2] sm:$0x3]  ;;  %s56_s24 = int_to_ptr.hbm [resolvable:$true] %s55_s24 }
   0xd   :  { %s53_s21 = sshll.u32 %s156_s0, 4  ;;  %v44_v1 = vld [vmem:[#allocation5] sm:$0x3]  ;;  %v43_v2 = vld [vmem:[#allocation2 + $0x2] sm:$0x3]  ;;  %s54_s21 = int_to_ptr.vmem [resolvable:$true] %s53_s21 }
   0xe   :  { %v45_v3 = vadd.f32 %v44_v1, %v42_v0  ;;  %v46_v4 = vadd.f32 %v44_v1, %v43_v2 }
  0x10   :  { %47 = vst [vmem:[#allocation7] sm:$0x3] %v45_v3 }
  0x11   :  { %48 = vst [vmem:[#allocation7 + $0x2] sm:$0x3] %v46_v4 }
  0x12   :  { %61 = dma.vmem_to_hbm [thread:$0]  %s54_s21, 64, %s56_s24, [#allocation4], %s153_s17, %s153_s17, %s154_s18  }
  0x13   :  { %150 = dma.done.wait [#allocation4], 64  }
  0x14   :  { %151 = vsyncadd [#allocation4], 4294967232 }
  0x15   :  { %66 = vsyncpa [#allocation3], 1 }
  0x16   :  { %67 = vsyncpa [#allocation6], 1 }
  0x17   :  { %68 = vsyncpa [#allocation4], 1 }

</bundles_post_ra>
